<compile_context>
chip_gen: v7x
topology: tpu7x:2x2x1
jax: 0.10.0
libtpu: 0.0.40
codegen_flags: <defaults>
</compile_context>

<pallas_src>
import numpy as np
import jax
import jax.numpy as jnp
from jax.experimental import pallas as pl
from jax.experimental.pallas import tpu as pltpu

LENGTH = 10                      # trajectory length
CHANNELS = 4
CONV_OUT = 16
KSIZE = 3
UNITS = 128
CONV_LEN = LENGTH - KSIZE + 1    # 8
FLAT_IN = CHANNELS * LENGTH      # 40  (conv-matmul K; intentionally NOT padded)
FLAT_CONV = CONV_OUT * CONV_LEN  # 128
TM_MAX = 2048                    # max batch tile (sweepable; multiple of 256)


def trajectory_kernel(x_ref, wc_ref, w1_ref, w2_ref, misc_ref, o_ref):
    # misc_ref rows: 0 = conv bias (flattened), 1 = fc1 bias, 2 = fc2 bias,
    #                3 = fc3 weight row, 4 = fc3 bias broadcast across lanes.
    # conv (as Toeplitz matmul, bf16 MXU / f32 accumulate) + flatten + relu
    h = jnp.dot(x_ref[...], wc_ref[...], preferred_element_type=jnp.float32)
    h = jnp.maximum(h + misc_ref[0:1, :], 0.0)
    # fc1 + relu
    h = jnp.dot(h.astype(jnp.bfloat16), w1_ref[...],
                preferred_element_type=jnp.float32)
    h = jnp.maximum(h + misc_ref[1:2, :], 0.0)
    # fc2 + relu
    h = jnp.dot(h.astype(jnp.bfloat16), w2_ref[...],
                preferred_element_type=jnp.float32)
    h = jnp.maximum(h + misc_ref[2:3, :], 0.0)
    # fc3 (N=1): VPU multiply + XLU lane reduction instead of a 1-column matmul
    o_ref[...] = (jnp.sum(h * misc_ref[3:4, :], axis=-1, keepdims=True)
                  + misc_ref[4:5, 0:1])


def build_toeplitz_conv_weight(Wc, bc):
    """Fold Conv1d(4,16,3) weights into an equivalent (FLAT_CONV, FLAT_IN) matmul.

    Wbig[o*CONV_LEN + t, c*LENGTH + (t+k)] = Wc[o, c, k]
    bbig[o*CONV_LEN + t]                   = bc[o]
    """
    Wc = np.asarray(Wc, dtype=np.float32)
    bc = np.asarray(bc, dtype=np.float32)
    Wbig = np.zeros((FLAT_CONV, FLAT_IN), dtype=np.float32)
    o, t, c, k = np.meshgrid(np.arange(CONV_OUT), np.arange(CONV_LEN),
                             np.arange(CHANNELS), np.arange(KSIZE),
                             indexing="ij")
    rows = (o * CONV_LEN + t).ravel()
    cols = (c * LENGTH + t + k).ravel()
    Wbig[rows, cols] = Wc[o, c, k].ravel()
    bbig = np.repeat(bc, CONV_LEN)           # row o*CONV_LEN+t -> bc[o]
    return Wbig, bbig


def prepare_params(Wc, bc, W1, b1, W2, b2, W3, b3):
    """One-time host-side folding of the module parameters into kernel form."""
    Wbig, bbig = build_toeplitz_conv_weight(Wc, bc)              # (128, 40), (128,)
    wc_t = jnp.asarray(Wbig.T, dtype=jnp.bfloat16)               # (40, 128)
    w1_t = jnp.asarray(np.asarray(W1).T, dtype=jnp.bfloat16)     # (128, 128)
    w2_t = jnp.asarray(np.asarray(W2).T, dtype=jnp.bfloat16)     # (128, 128)
    # Pack the small operands into a single (8, 128) f32 tile (review item).
    misc = np.zeros((8, UNITS), dtype=np.float32)
    misc[0, :] = bbig
    misc[1, :] = np.asarray(b1, dtype=np.float32)
    misc[2, :] = np.asarray(b2, dtype=np.float32)
    misc[3, :] = np.asarray(W3, dtype=np.float32).reshape(-1)
    misc[4, :] = np.float32(np.asarray(b3, dtype=np.float32).reshape(()))
    return (wc_t, w1_t, w2_t, jnp.asarray(misc))


def _choose_tile(batch):
    """Pick the batch tile TM (multiple of 256) and grid size.

    * Large TM amortizes the ~0.35 us fixed per-grid-step overhead.
    * Keep >= 2 grid steps whenever the batch allows, so the "parallel" grid
      axis can shard across v7x's two TensorCores (v5e/v6e: harmless).
    * Small batches adapt TM down instead of padding to a huge tile.
    """
    b_rounded = max(256, ((batch + 255) // 256) * 256)
    tm = min(TM_MAX, b_rounded)
    if b_rounded // tm < 2 and b_rounded >= 512:
        half = -(-b_rounded // 2)
        tm = max(256, ((half + 255) // 256) * 256)   # split into 2 tiles
    num_tiles = -(-batch // tm)
    return tm, num_tiles


@jax.jit
def trajectory_model_forward(x, params):
    """x: (B, CHANNELS, LENGTH) float32. Returns (B, 1) float32."""
    wc_t, w1_t, w2_t, misc = params
    B = x.shape[0]
    TM, num_tiles = _choose_tile(B)
    B_pad = num_tiles * TM

    # Channel-major flatten (matches torch reshape(B,-1): index c*LENGTH + l),
    # bf16 cast for the MXU, batch pad to a TM multiple.  K stays at 40 (no
    # lane padding).  allow_input_fusion below lets XLA fuse this reshape /
    # cast / pad into the pallas_call operand instead of a separate HBM pass.
    x_flat = x.reshape(B, FLAT_IN).astype(jnp.bfloat16)
    x_pad = jnp.pad(x_flat, ((0, B_pad - B), (0, 0)))

    flops = 2 * B_pad * (FLAT_IN * FLAT_CONV + FLAT_CONV * UNITS
                         + UNITS * UNITS + UNITS)
    bytes_accessed = (x_pad.size * 2
                      + (wc_t.size + w1_t.size + w2_t.size) * 2
                      + misc.size * 4
                      + B_pad * 4)

    const2 = lambda i: (0, 0)            # weights stay resident across the grid
    out = pl.pallas_call(
        trajectory_kernel,
        out_shape=jax.ShapeDtypeStruct((B_pad, 1), jnp.float32),
        grid=(num_tiles,),
        in_specs=[
            pl.BlockSpec((TM, FLAT_IN), lambda i: (i, 0)),   # x: streamed per tile
            pl.BlockSpec((FLAT_IN, FLAT_CONV), const2),      # conv-as-matmul weight
            pl.BlockSpec((FLAT_CONV, UNITS), const2),        # fc1 weight
            pl.BlockSpec((UNITS, UNITS), const2),            # fc2 weight
            pl.BlockSpec((8, UNITS), const2),                # packed biases + fc3
        ],
        out_specs=pl.BlockSpec((TM, 1), lambda i: (i, 0)),
        compiler_params=pltpu.CompilerParams(
            dimension_semantics=("parallel",),
            allow_input_fusion=[True, False, False, False, False],
        ),
        cost_estimate=pl.CostEstimate(flops=flops, transcendentals=0,
                                      bytes_accessed=bytes_accessed),
    )(x_pad, wc_t, w1_t, w2_t, misc)
    return out[:B]


def reference_forward(x, Wc, bc, W1, b1, W2, b2, W3, b3):
    """Pure-JAX f32 reference mirroring the PyTorch module semantics."""
    B = x.shape[0]
    outs = []
    for t in range(CONV_LEN):
        patch = x[:, :, t:t + KSIZE]                      # (B, 4, 3)
        outs.append(jnp.einsum('bck,ock->bo', patch, Wc) + bc)
    y = jnp.stack(outs, axis=-1)                          # (B, 16, 8)
    h = jnp.maximum(y.reshape(B, -1), 0.0)                # channel-major flatten
    h = jnp.maximum(h @ W1.T + b1, 0.0)
    h = jnp.maximum(h @ W2.T + b2, 0.0)
    return h @ W3.T + b3


if __name__ == "__main__":
    key = jax.random.PRNGKey(0)
    keys = jax.random.split(key, 10)

    B = 4
    x = jax.random.normal(keys[0], (B, CHANNELS, LENGTH), dtype=jnp.float32)

    def init_linear(kw, kb, fan_in, shape_w, shape_b):
        bound = 1.0 / np.sqrt(fan_in)
        w = jax.random.uniform(kw, shape_w, jnp.float32, -bound, bound)
        b = jax.random.uniform(kb, shape_b, jnp.float32, -bound, bound)
        return w, b

    # Conv1d(4, 16, 3): weight (16, 4, 3), bias (16,)
    Wc, bc = init_linear(keys[1], keys[2], CHANNELS * KSIZE,
                         (CONV_OUT, CHANNELS, KSIZE), (CONV_OUT,))
    # fc1: (128, 16*(L-2)=128)
    W1, b1 = init_linear(keys[3], keys[4], FLAT_CONV, (UNITS, FLAT_CONV), (UNITS,))
    # fc2: (128, 128)
    W2, b2 = init_linear(keys[5], keys[6], UNITS, (UNITS, UNITS), (UNITS,))
    # fc3: (1, 128)
    W3, b3 = init_linear(keys[7], keys[8], UNITS, (1, UNITS), (1,))

    # one-time parameter folding (hoisted out of the per-call forward path)
    params = prepare_params(Wc, bc, W1, b1, W2, b2, W3, b3)

    # small-batch path (adaptive TM=256, single tile)
    out = jax.block_until_ready(trajectory_model_forward(x, params))
    ref = reference_forward(x, Wc, bc, W1, b1, W2, b2, W3, b3)
    # bf16 MXU inputs / f32 accumulation => loose-but-meaningful tolerance
    np.testing.assert_allclose(np.asarray(out), np.asarray(ref),
                               rtol=5e-2, atol=5e-2)

    # multi-tile path (>=2 grid steps -> "parallel" sharding on v7x megacore)
    B2 = 520
    x2 = jax.random.normal(keys[9], (B2, CHANNELS, LENGTH), dtype=jnp.float32)
    out2 = jax.block_until_ready(trajectory_model_forward(x2, params))
    ref2 = reference_forward(x2, Wc, bc, W1, b1, W2, b2, W3, b3)
    np.testing.assert_allclose(np.asarray(out2), np.asarray(ref2),
                               rtol=5e-2, atol=5e-2)

    print("KERNEL_OK")
</pallas_src>

<mosaic_0001>
module attributes {stable_mosaic.version = 11 : i64} {
  func.func @trajectory_kernel(%arg0: i32, %arg1: memref<256x40xbf16, #tpu.memory_space<vmem>>, %arg2: memref<40x128xbf16, #tpu.memory_space<vmem>>, %arg3: memref<128x128xbf16, #tpu.memory_space<vmem>>, %arg4: memref<128x128xbf16, #tpu.memory_space<vmem>>, %arg5: memref<8x128xf32, #tpu.memory_space<vmem>>, %arg6: memref<256x1xf32, #tpu.memory_space<vmem>>) attributes {dimension_semantics = [#tpu.dimension_semantics<parallel>], iteration_bounds = array<i64: 1>, scalar_prefetch = 0 : i64, scratch_operands = 0 : i64, tpu.core_type = #tpu.core_type<tc>, window_params = [{transform_indices = @transform_0, window_bounds = array<i64: 256, 40>}, {pipeline_mode = #tpu.pipeline_mode<synchronous>, transform_indices = @transform_1, window_bounds = array<i64: 40, 128>}, {pipeline_mode = #tpu.pipeline_mode<synchronous>, transform_indices = @transform_2, window_bounds = array<i64: 128, 128>}, {pipeline_mode = #tpu.pipeline_mode<synchronous>, transform_indices = @transform_3, window_bounds = array<i64: 128, 128>}, {pipeline_mode = #tpu.pipeline_mode<synchronous>, transform_indices = @transform_4, window_bounds = array<i64: 8, 128>}, {transform_indices = @transform_5, window_bounds = array<i64: 256, 1>}]} {
    %c0 = arith.constant 0 : index
    %c0_0 = arith.constant 0 : index
    %0 = vector.load %arg1[%c0, %c0_0] : memref<256x40xbf16, #tpu.memory_space<vmem>>, vector<256x40xbf16>
    %c0_1 = arith.constant 0 : index
    %c0_2 = arith.constant 0 : index
    %1 = vector.load %arg2[%c0_1, %c0_2] : memref<40x128xbf16, #tpu.memory_space<vmem>>, vector<40x128xbf16>
    %cst = arith.constant dense<0.000000e+00> : vector<256x128xf32>
    %2 = tpu.matmul %0, %1, %cst {dimension_numbers = #tpu.dot_dimension_numbers<[1], [0], [0], [1], [0, 0, 1, 1], [], []>} : vector<256x40xbf16>, vector<40x128xbf16>, vector<256x128xf32> -> vector<256x128xf32>
    %c0_3 = arith.constant 0 : index
    %c0_4 = arith.constant 0 : index
    %3 = vector.load %arg5[%c0_3, %c0_4] : memref<8x128xf32, #tpu.memory_space<vmem>>, vector<1x128xf32>
    %4 = vector.broadcast %3 : vector<1x128xf32> to vector<256x128xf32>
    %5 = arith.addf %2, %4 : vector<256x128xf32>
    %cst_5 = arith.constant 0.000000e+00 : f32
    %6 = vector.broadcast %cst_5 : f32 to vector<256x128xf32>
    %7 = arith.maximumf %5, %6 : vector<256x128xf32>
    %8 = arith.truncf %7 : vector<256x128xf32> to vector<256x128xbf16>
    %c0_6 = arith.constant 0 : index
    %c0_7 = arith.constant 0 : index
    %9 = vector.load %arg3[%c0_6, %c0_7] : memref<128x128xbf16, #tpu.memory_space<vmem>>, vector<128x128xbf16>
    %cst_8 = arith.constant dense<0.000000e+00> : vector<256x128xf32>
    %10 = tpu.matmul %8, %9, %cst_8 {dimension_numbers = #tpu.dot_dimension_numbers<[1], [0], [0], [1], [0, 0, 1, 1], [], []>} : vector<256x128xbf16>, vector<128x128xbf16>, vector<256x128xf32> -> vector<256x128xf32>
    %c1 = arith.constant 1 : index
    %c0_9 = arith.constant 0 : index
    %11 = vector.load %arg5[%c1, %c0_9] : memref<8x128xf32, #tpu.memory_space<vmem>>, vector<1x128xf32>
    %12 = vector.broadcast %11 : vector<1x128xf32> to vector<256x128xf32>
    %13 = arith.addf %10, %12 : vector<256x128xf32>
    %cst_10 = arith.constant 0.000000e+00 : f32
    %14 = vector.broadcast %cst_10 : f32 to vector<256x128xf32>
    %15 = arith.maximumf %13, %14 : vector<256x128xf32>
    %16 = arith.truncf %15 : vector<256x128xf32> to vector<256x128xbf16>
    %c0_11 = arith.constant 0 : index
    %c0_12 = arith.constant 0 : index
    %17 = vector.load %arg4[%c0_11, %c0_12] : memref<128x128xbf16, #tpu.memory_space<vmem>>, vector<128x128xbf16>
    %cst_13 = arith.constant dense<0.000000e+00> : vector<256x128xf32>
    %18 = tpu.matmul %16, %17, %cst_13 {dimension_numbers = #tpu.dot_dimension_numbers<[1], [0], [0], [1], [0, 0, 1, 1], [], []>} : vector<256x128xbf16>, vector<128x128xbf16>, vector<256x128xf32> -> vector<256x128xf32>
    %c2 = arith.constant 2 : index
    %c0_14 = arith.constant 0 : index
    %19 = vector.load %arg5[%c2, %c0_14] : memref<8x128xf32, #tpu.memory_space<vmem>>, vector<1x128xf32>
    %20 = vector.broadcast %19 : vector<1x128xf32> to vector<256x128xf32>
    %21 = arith.addf %18, %20 : vector<256x128xf32>
    %cst_15 = arith.constant 0.000000e+00 : f32
    %22 = vector.broadcast %cst_15 : f32 to vector<256x128xf32>
    %23 = arith.maximumf %21, %22 : vector<256x128xf32>
    %c3 = arith.constant 3 : index
    %c0_16 = arith.constant 0 : index
    %24 = vector.load %arg5[%c3, %c0_16] : memref<8x128xf32, #tpu.memory_space<vmem>>, vector<1x128xf32>
    %25 = vector.broadcast %24 : vector<1x128xf32> to vector<256x128xf32>
    %26 = arith.mulf %23, %25 : vector<256x128xf32>
    %cst_17 = arith.constant dense<0.000000e+00> : vector<256xf32>
    %27 = vector.multi_reduction <add>, %26, %cst_17 [1] : vector<256x128xf32> to vector<256xf32>
    %28 = vector.shape_cast %27 : vector<256xf32> to vector<256x1xf32>
    %c4 = arith.constant 4 : index
    %c0_18 = arith.constant 0 : index
    %29 = vector.load %arg5[%c4, %c0_18] : memref<8x128xf32, #tpu.memory_space<vmem>>, vector<1x1xf32>
    %30 = vector.broadcast %29 : vector<1x1xf32> to vector<256x1xf32>
    %31 = arith.addf %28, %30 : vector<256x1xf32>
    %c0_19 = arith.constant 0 : index
    %c0_20 = arith.constant 0 : index
    %32 = vector.load %arg6[%c0_19, %c0_20] : memref<256x1xf32, #tpu.memory_space<vmem>>, vector<256x1xf32>
    tpu.vector_store %arg6[%c0_19, %c0_20], %31 {strides = array<i32>} : memref<256x1xf32, #tpu.memory_space<vmem>>, vector<256x1xf32>,
    return
  }
  func.func @transform_0(%arg0: i32) -> (i32, i32) {
    %c0_i32 = arith.constant 0 : i32
    %c0_i32_0 = arith.constant 0 : i32
    return %arg0, %c0_i32 : i32, i32
  }
  func.func @transform_1(%arg0: i32) -> (i32, i32) {
    %c0_i32 = arith.constant 0 : i32
    %c0_i32_0 = arith.constant 0 : i32
    %c0_i32_1 = arith.constant 0 : i32
    return %c0_i32, %c0_i32_0 : i32, i32
  }
  func.func @transform_2(%arg0: i32) -> (i32, i32) {
    %c0_i32 = arith.constant 0 : i32
    %c0_i32_0 = arith.constant 0 : i32
    %c0_i32_1 = arith.constant 0 : i32
    return %c0_i32, %c0_i32_0 : i32, i32
  }
  func.func @transform_3(%arg0: i32) -> (i32, i32) {
    %c0_i32 = arith.constant 0 : i32
    %c0_i32_0 = arith.constant 0 : i32
    %c0_i32_1 = arith.constant 0 : i32
    return %c0_i32, %c0_i32_0 : i32, i32
  }
  func.func @transform_4(%arg0: i32) -> (i32, i32) {
    %c0_i32 = arith.constant 0 : i32
    %c0_i32_0 = arith.constant 0 : i32
    %c0_i32_1 = arith.constant 0 : i32
    return %c0_i32, %c0_i32_0 : i32, i32
  }
  func.func @transform_5(%arg0: i32) -> (i32, i32) {
    %c0_i32 = arith.constant 0 : i32
    %c0_i32_0 = arith.constant 0 : i32
    return %arg0, %c0_i32 : i32, i32
  }
}

</mosaic_0001>

<bundles_post_ra>
// kernel: trajectory_model_forward.2
= control target key start
LH: loop header
LB: loop body
LE: loop exit
PB: predicated region body
PF: predicated region fallthrough
CT: control target
= control target key end

     0   :  { %s2175_s0 = inlined_call_operand.vmem [shape: bf16[40,128], index: 0, kind: input, shape index: {}]   ;;  %s2176_s1 = inlined_call_operand.hbm [shape: bf16[128,128], index: 1, kind: input, shape index: {}]   ;;  %s2177_s2 = inlined_call_operand.hbm [shape: bf16[128,128], index: 2, kind: input, shape index: {}]   ;;  %s2178_s3 = inlined_call_operand.vmem [shape: f32[8,128], index: 3, kind: input, shape index: {}]   ;;  %s2179_s4 = inlined_call_operand.vmem [shape: bf16[4,40], index: 4, kind: input, shape index: {}]   ;;  %s2180_s5 = inlined_call_operand.<no memory space> [shape: bf16[], index: 5, kind: input, shape index: {}]   ;;  %s2181_s6 = inlined_call_operand.vmem [shape: f32[256,1], index: 6, kind: output, shape index: {}]  }
   0x1   :  { %v11_v0 = vstv %s2180_s5 }
   0x2   :  { %v1791_v1 = vunpack.i.l.bf16 %v11_v0 }
   0x3   :  { %16 = vsyncpa [#allocation8], 0 }
   0x4   :  { %17 = vsyncpa [#allocation10], 0  ;;  %s1749_s23 = smov [#allocation7]   ;;  %s1701_s27 = scalar_lea.hbm %s2176_s1, 1024 }
   0x5   :  { %s27_s24 = sshll.u32 %s1749_s23, 4  ;;  %p1702_p0 = scmp.ne.s32.totalorder %s2176_s1, %s1701_s27  ;;  %s28_s24 = int_to_ptr.vmem [resolvable:$true] %s27_s24 }
   0x6   :  { %p1705_p1 = scmp.lt.u32.totalorder %s1701_s27, %s2176_s1 }
   0x8   :  { %p1707_p2 = pnand %p1705_p1, %p1702_p0 }
   0xa   :  { %1710 = shalt.err (!%p1707_p2)
}
   0xb   :  { %s1711_s5 = scalar_lea.vmem %s28_s24, 1024  ;;  %p1716_p4 = scmp.lt.s32.totalorder %s28_s24, %s28_s24 }
   0xc   :  { %p1712_p3 = scmp.ne.s32.totalorder %s28_s24, %s1711_s5  ;;  %p1717_p5 = scmp.lt.s32.totalorder %s1711_s5, %s1711_s5 }
   0xe   :  { %p1718_p6 = por %p1717_p5, %p1716_p4 }
  0x10   :  { %p1719_p7 = pnand %p1718_p6, %p1712_p3 }
  0x12   :  { %1722 = shalt.err (!%p1719_p7)
}
  0x13   :  { %s1750_s8 = smov 64   ;;  %s1751_s9 = smov 4  }
  0x14   :  { %33 = dma.hbm_to_vmem [thread:$0]  %s2176_s1, 1024, %s28_s24, [#allocation8], %s1750_s8, %s1750_s8, %s1751_s9  }
  0x15   :  { %s1752_s12 = smov [#allocation9]   ;;  %s1723_s16 = scalar_lea.hbm %s2177_s2, 1024 }
  0x16   :  { %s39_s13 = sshll.u32 %s1752_s12, 4  ;;  %p1724_p8 = scmp.ne.s32.totalorder %s2177_s2, %s1723_s16  ;;  %s40_s13 = int_to_ptr.vmem [resolvable:$true] %s39_s13 }
  0x17   :  { %p1727_p9 = scmp.lt.u32.totalorder %s1723_s16, %s2177_s2 }
  0x19   :  { %p1729_p10 = pnand %p1727_p9, %p1724_p8 }
  0x1b   :  { %1732 = shalt.err (!%p1729_p10)
}
  0x1c   :  { %s1733_s21 = scalar_lea.vmem %s40_s13, 1024  ;;  %p1738_p12 = scmp.lt.s32.totalorder %s40_s13, %s40_s13 }
  0x1d   :  { %p1734_p11 = scmp.ne.s32.totalorder %s40_s13, %s1733_s21  ;;  %p1739_p13 = scmp.lt.s32.totalorder %s1733_s21, %s1733_s21 }
  0x1f   :  { %p1740_p0 = por %p1739_p13, %p1738_p12 }
  0x21   :  { %p1741_p1 = pnand %p1740_p0, %p1734_p11 }
  0x23   :  { %1744 = shalt.err (!%p1741_p1)
}
  0x24   :  { %45 = dma.hbm_to_vmem [thread:$0]  %s2177_s2, 1024, %s40_s13, [#allocation10], %s1750_s8, %s1750_s8, %s1751_s9  }
  0x25   :  { %1745 = dma.done.wait [#allocation8], 1024  }
  0x26   :  { %1746 = vsyncadd [#allocation8], 4294966272 }
  0x27   :  { %1747 = dma.done.wait [#allocation10], 1024  }
  0x28   :  { %1748 = vsyncadd [#allocation10], 4294966272  ;;  %v1381_v2 = vpack.c.bf16 %v1791_v1, %v1791_v1  ;;  %v63_v3 = vlaneseq  ;;  %v1666_v6 = vld [vmem:[%s2175_s0] sm:$0xff]   ;;  %v1667_v7 = vld [vmem:[%s2175_s0 + $0x8] sm:$0xff]   ;;  %vm387_vm2 = vcmask 1043456   ;;  %vm338_vm3 = vcmask 326656  }
  0x29   :  { %1520 = vmatprep.subr.bf16.mxu0 %v1666_v6  ;;  %v60_v8 = vld [vmem:[%s2179_s4] sm:$0x3]  ;;  %1654 = vmatprep.subr.bf16.mxu1 %v1666_v6  ;;  %v1668_v10 = vld [vmem:[%s2175_s0 + $0x10] ss:$0 sps:$4 sm:$0xff]   ;;  %v1685_v23 = vld [vmem:[#allocation7] sm:$0xff]   ;;  %vm1278_vm4 = vcmask 7168  }
  0x2a   :  { %1382 = vst [vmem:[#allocation11 + $0x8] sm:$0xff] %v1381_v2   ;;  %1387 = vst [vmem:[#allocation11 + $0x10] sm:$0xff] %v1381_v2   ;;  %v64_v4 = vshrl.u32 %v63_v3, 7  ;;  %v69_v5 = vand.u32 127, %v63_v3  ;;  %1521 = vmatpush3.bf16.msra.mxu0 %v1666_v6  ;;  %v61_v9 = vunpack.c.l.bf16 %v60_v8  ;;  %1657 = vmatpush3.bf16.msra.mxu1 %v1666_v6  ;;  %v389_v14 = vsel %vm387_vm2, %v1668_v10, 0  ;;  %v1686_v24 = vld [vmem:[#allocation7 + $0x8] sm:$0xff]  }
  0x2b   :  { %1392 = vst [vmem:[#allocation11 + $0x18] sm:$0xff] %v1381_v2   ;;  %1397 = vst [vmem:[#allocation11 + $0x20] sm:$0xff] %v1381_v2   ;;  %1522 = vmatprep.subr.bf16.mxu0 %v1667_v7  ;;  %1655 = vmatprep.subr.bf16.mxu1 %v1667_v7  ;;  %v1687_v28 = vld [vmem:[#allocation7 + $0x10] sm:$0xff]   ;;  %v1688_v30 = vld [vmem:[#allocation7 + $0x18] sm:$0xff]  }
  0x2c   :  { %1402 = vst [vmem:[#allocation11 + $0x28] sm:$0xff] %v1381_v2   ;;  %1407 = vst [vmem:[#allocation11 + $0x30] sm:$0xff] %v1381_v2   ;;  %vm66_vm0 = vcmp.lt.s32.totalorder %v64_v4, 4  ;;  %vm71_vm1 = vcmp.lt.s32.totalorder %v69_v5, 40  ;;  %v1689_v33 = vld [vmem:[#allocation7 + $0x20] sm:$0xff]   ;;  %v1690_v35 = vld [vmem:[#allocation7 + $0x28] sm:$0xff]  }
  0x2d   :  { %1412 = vst [vmem:[#allocation11 + $0x38] sm:$0xff] %v1381_v2   ;;  %1417 = vst [vmem:[#allocation11 + $0x40] sm:$0xff] %v1381_v2   ;;  %v67_v11 = vsel %vm66_vm0, %v61_v9, %v1791_v1  ;;  %v1691_v37 = vld [vmem:[#allocation7 + $0x30] sm:$0xff]   ;;  %v1692_v38 = vld [vmem:[#allocation7 + $0x38] sm:$0xff]  }
  0x2e   :  { %1422 = vst [vmem:[#allocation11 + $0x48] sm:$0xff] %v1381_v2   ;;  %1427 = vst [vmem:[#allocation11 + $0x50] sm:$0xff] %v1381_v2   ;;  %v72_v12 = vsel %vm71_vm1, %v67_v11, %v1791_v1  ;;  %1523 = vmatpush3.bf16.msra.mxu0 %v1667_v7  ;;  %1658 = vmatpush3.bf16.msra.mxu1 %v1667_v7  ;;  %v1693_v39 = vld [vmem:[#allocation9] sm:$0xff]   ;;  %v1694_v40 = vld [vmem:[#allocation9 + $0x8] sm:$0xff]  }
  0x2f   :  { %1432 = vst [vmem:[#allocation11 + $0x58] sm:$0xff] %v1381_v2   ;;  %1437 = vst [vmem:[#allocation11 + $0x60] sm:$0xff] %v1381_v2   ;;  %v1376_v13 = vpack.c.bf16 %v1791_v1, %v72_v12  ;;  %1660 = vmatprep.subr.msk.bf16.mxu0 %vm387_vm2, %v1668_v10  ;;  %1661 = vmatprep.subr.msk.bf16.mxu1 %vm387_vm2, %v1668_v10  ;;  %v1695_v41 = vld [vmem:[#allocation9 + $0x10] sm:$0xff]   ;;  %v1696_v42 = vld [vmem:[#allocation9 + $0x18] sm:$0xff]  }
  0x30   :  { %1442 = vst [vmem:[#allocation11 + $0x68] sm:$0xff] %v1381_v2   ;;  %1447 = vst [vmem:[#allocation11 + $0x70] sm:$0xff] %v1381_v2   ;;  %v1697_v43 = vld [vmem:[#allocation9 + $0x20] sm:$0xff]   ;;  %v1698_v44 = vld [vmem:[#allocation9 + $0x28] sm:$0xff]  }
  0x31   :  { %1452 = vst [vmem:[#allocation11 + $0x78] sm:$0xff] %v1381_v2   ;;  %1377 = vst [vmem:[#allocation11] sm:$0xff] %v1376_v13   ;;  %v1670_v18 = vld [vmem:[#allocation11 + $0x8] sm:$0xff]   ;;  %v1671_v19 = vld [vmem:[#allocation11 + $0x10] sm:$0xff]  }
  0x32   :  { %1525 = vmatpush3.bf16.msra.mxu0 %v389_v14  ;;  %1659 = vmatpush3.bf16.msra.mxu1 %v389_v14  ;;  %v1672_v25 = vld [vmem:[#allocation11 + $0x18] sm:$0xff]   ;;  %v1673_v26 = vld [vmem:[#allocation11 + $0x20] sm:$0xff]   ;;  %v1853_v45 = vld [vmem:[%s2178_s3] ss:$0 sm:$0xff] }
  0x33   :  { %1558 = vmatprep.subr.bf16.mxu1 %v1685_v23  ;;  %v1674_v31 = vld [vmem:[#allocation11 + $0x28] sm:$0xff]   ;;  %v1675_v32 = vld [vmem:[#allocation11 + $0x30] sm:$0xff]   ;;  %1606 = vmatprep.subr.bf16.mxu0 %v1693_v39 }
  0x34   :  { %v1677_v15 = vld [vmem:[#allocation11 + $0x40] sm:$0xff]   ;;  %v1676_v36 = vld [vmem:[#allocation11 + $0x38] sm:$0xff]  }
  0x35   :  { %v1678_v16 = vld [vmem:[#allocation11 + $0x48] sm:$0xff]   ;;  %1542 = vmatprep.mubr.msk.bf16.mxu1 %vm338_vm3, %v1677_v15  ;;  %v1679_v17 = vld [vmem:[#allocation11 + $0x50] sm:$0xff]  }
  0x36   :  { %1543 = vmatmul.mubr.msk.bf16.vlgmr.msra.gmra.mrb[0].mxu1 %vm338_vm3, %v1678_v16  ;;  %v1680_v21 = vld [vmem:[#allocation11 + $0x58] sm:$0xff]   ;;  %v1681_v22 = vld [vmem:[#allocation11 + $0x60] sm:$0xff]  }
  0x37   :  { %1546 = vmatprep.mubr.msk.bf16.mxu1 %vm338_vm3, %v1679_v17  ;;  %1559 = vmatpush3.bf16.msra.mxu1 %v1685_v23  ;;  %v1682_v27 = vld [vmem:[#allocation11 + $0x68] sm:$0xff]   ;;  %v1683_v29 = vld [vmem:[#allocation11 + $0x70] sm:$0xff]  }
  0x38   :  { %v1669_v20 = vld [vmem:[#allocation11] sm:$0xff]   ;;  %1560 = vmatprep.subr.bf16.mxu1 %v1686_v24  ;;  %v1684_v34 = vld [vmem:[#allocation11 + $0x78] sm:$0xff]  }
  0x39   :  { %1526 = vmatprep.mubr.msk.bf16.mxu0 %vm338_vm3, %v1669_v20 }
  0x3a   :  { %1527 = vmatmul.mubr.msk.bf16.vlgmr.msra.gmra.mrb[0].mxu0 %vm338_vm3, %v1670_v18 }
  0x3b   :  { %1530 = vmatprep.mubr.msk.bf16.mxu0 %vm338_vm3, %v1671_v19  ;;  %1561 = vmatpush3.bf16.msra.mxu1 %v1686_v24 }
  0x3c   :  { %1562 = vmatprep.subr.bf16.mxu1 %v1687_v28  ;;  %1607 = vmatpush3.bf16.msra.mxu0 %v1693_v39 }
  0x3d   :  { %1608 = vmatprep.subr.bf16.mxu0 %v1694_v40 }
  0x3e   :  { %1547 = vmatmul.mubr.msk.bf16.gmra.mrb[4].mxu1 %vm338_vm3, %v1680_v21 }
  0x3f   :  { %1550 = vmatprep.mubr.msk.bf16.mxu1 %vm338_vm3, %v1681_v22  ;;  %1563 = vmatpush3.bf16.msra.mxu1 %v1687_v28 }
  0x40   :  { %1564 = vmatprep.subr.bf16.mxu1 %v1688_v30  ;;  %1609 = vmatpush3.bf16.msra.mxu0 %v1694_v40 }
  0x41   :  { %1610 = vmatprep.subr.bf16.mxu0 %v1695_v41 }
  0x42   :  { %1531 = vmatmul.mubr.msk.bf16.gmra.mrb[4].mxu0 %vm338_vm3, %v1672_v25 }
  0x43   :  { %1534 = vmatprep.mubr.msk.bf16.mxu0 %vm338_vm3, %v1673_v26  ;;  %1565 = vmatpush3.bf16.msra.mxu1 %v1688_v30 }
  0x44   :  { %1566 = vmatprep.subr.bf16.mxu1 %v1689_v33  ;;  %1611 = vmatpush3.bf16.msra.mxu0 %v1695_v41 }
  0x45   :  { %1612 = vmatprep.subr.bf16.mxu0 %v1696_v42 }
  0x46   :  { %1551 = vmatmul.mubr.msk.bf16.gmra.mrb[8].mxu1 %vm338_vm3, %v1682_v27 }
  0x47   :  { %1554 = vmatprep.mubr.msk.bf16.mxu1 %vm338_vm3, %v1683_v29  ;;  %1567 = vmatpush3.bf16.msra.mxu1 %v1689_v33 }
  0x48   :  { %1568 = vmatprep.subr.bf16.mxu1 %v1690_v35  ;;  %1613 = vmatpush3.bf16.msra.mxu0 %v1696_v42 }
  0x49   :  { %1614 = vmatprep.subr.bf16.mxu0 %v1697_v43 }
  0x4a   :  { %1535 = vmatmul.mubr.msk.bf16.gmra.mrb[8].mxu0 %vm338_vm3, %v1674_v31 }
  0x4b   :  { %1538 = vmatprep.mubr.msk.bf16.mxu0 %vm338_vm3, %v1675_v32  ;;  %1569 = vmatpush3.bf16.msra.mxu1 %v1690_v35 }
  0x4c   :  { %1570 = vmatprep.subr.bf16.mxu1 %v1691_v37  ;;  %1615 = vmatpush3.bf16.msra.mxu0 %v1697_v43 }
  0x4d   :  { %1616 = vmatprep.subr.bf16.mxu0 %v1698_v44 }
  0x4e   :  { %1555 = vmatmul.mubr.msk.bf16.gmra.mrb[12].mxu1 %vm338_vm3, %v1684_v34 }
  0x4f   :  { %1571 = vmatpush3.bf16.msra.mxu1 %v1691_v37 }
  0x50   :  { %1572 = vmatprep.subr.bf16.mxu1 %v1692_v38  ;;  %1617 = vmatpush3.bf16.msra.mxu0 %v1698_v44 }
  0x52   :  { %1539 = vmatmul.mubr.msk.bf16.gmra.mrb[12].mxu0 %vm338_vm3, %v1676_v36 }
  0x53   :  { %1573 = vmatpush3.bf16.msra.mxu1 %v1692_v38 }
 0x109   :  { %v1544_v46 = vpop.f32.mrb[0].mxu1 }
 0x10a   :  { %v498_v47 = vadd.f32 %v1544_v46, %v1853_v45  ;;  %v489_v48 = vpop.f32.mrb[1].mxu1 }
 0x10b   :  { %v490_v49 = vadd.f32 %v1853_v45, %v489_v48  ;;  %v1545_v50 = vpop.f32.mrb[2].mxu1 }
 0x10c   :  { %v570_v51 = vmax.f32 %v498_v47, 0.0  ;;  %v501_v52 = vadd.f32 %v1545_v50, %v1853_v45  ;;  %v492_v53 = vpop.f32.mrb[3].mxu1 }
 0x10d   :  { %v568_v54 = vmax.f32 %v490_v49, 0.0  ;;  %v493_v55 = vadd.f32 %v1853_v45, %v492_v53  ;;  %v1528_v56 = vpop.f32.mrb[0].mxu0 }
 0x10e   :  { %v571_v57 = vmax.f32 %v501_v52, 0.0  ;;  %v434_v58 = vadd.f32 %v1528_v56, %v1853_v45  ;;  %v425_v59 = vpop.f32.mrb[1].mxu0 }
 0x10f   :  { %v569_v60 = vmax.f32 %v493_v55, 0.0  ;;  %v426_v61 = vadd.f32 %v1853_v45, %v425_v59  ;;  %v1529_v62 = vpop.f32.mrb[2].mxu0 }
 0x110   :  { %v1861_v63 = vpack.c.bf16 %v571_v57, %v570_v51  ;;  %v437_v0 = vadd.f32 %v1529_v62, %v1853_v45  ;;  %v428_v1 = vpop.f32.mrb[3].mxu0  ;;  %v554_v7 = vmax.f32 %v434_v58, 0.0 }
 0x111   :  { %v1864_v2 = vpack.c.bf16 %v569_v60, %v568_v54  ;;  %v1548_v3 = vpop.f32.mrb[4].mxu1  ;;  %v429_v4 = vadd.f32 %v1853_v45, %v428_v1  ;;  %v552_v11 = vmax.f32 %v426_v61, 0.0 }
 0x112   :  { %v514_v5 = vadd.f32 %v1548_v3, %v1853_v45  ;;  %v505_v6 = vpop.f32.mrb[5].mxu1  ;;  %v555_v8 = vmax.f32 %v437_v0, 0.0 }
 0x113   :  { %v506_v9 = vadd.f32 %v1853_v45, %v505_v6  ;;  %v1549_v10 = vpop.f32.mrb[6].mxu1  ;;  %v553_v12 = vmax.f32 %v429_v4, 0.0 }
 0x114   :  { %v574_v13 = vmax.f32 %v514_v5, 0.0  ;;  %v517_v14 = vadd.f32 %v1549_v10, %v1853_v45  ;;  %v508_v15 = vpop.f32.mrb[7].mxu1  ;;  %v585_v16 = vpack.c.bf16 %v555_v8, %v554_v7 }
 0x115   :  { %v572_v17 = vmax.f32 %v506_v9, 0.0  ;;  %v509_v18 = vadd.f32 %v1853_v45, %v508_v15  ;;  %v584_v19 = vpack.c.bf16 %v553_v12, %v552_v11  ;;  %v1532_v20 = vpop.f32.mrb[4].mxu0 }
 0x116   :  { %v575_v21 = vmax.f32 %v517_v14, 0.0  ;;  %v450_v22 = vadd.f32 %v1532_v20, %v1853_v45  ;;  %v441_v23 = vpop.f32.mrb[5].mxu0 }
 0x117   :  { %v573_v24 = vmax.f32 %v509_v18, 0.0  ;;  %v442_v25 = vadd.f32 %v1853_v45, %v441_v23  ;;  %v1533_v26 = vpop.f32.mrb[6].mxu0  ;;  %1574 = vmatprep.mubr.bf16.mxu1 %v584_v19 }
 0x118   :  { %v1873_v27 = vpack.c.bf16 %v575_v21, %v574_v13  ;;  %v453_v28 = vadd.f32 %v1533_v26, %v1853_v45  ;;  %v444_v29 = vpop.f32.mrb[7].mxu0  ;;  %1575 = vmatmul.mubr.bf16.vlgmr.msra.gmra.mrb[16].mxu1 %v585_v16  ;;  %v558_v35 = vmax.f32 %v450_v22, 0.0 }
 0x119   :  { %v1876_v30 = vpack.c.bf16 %v573_v24, %v572_v17  ;;  %v1552_v31 = vpop.f32.mrb[8].mxu1  ;;  %v445_v32 = vadd.f32 %v1853_v45, %v444_v29  ;;  %v556_v39 = vmax.f32 %v442_v25, 0.0 }
 0x11a   :  { %v530_v33 = vadd.f32 %v1552_v31, %v1853_v45  ;;  %v521_v34 = vpop.f32.mrb[9].mxu1  ;;  %v559_v36 = vmax.f32 %v453_v28, 0.0 }
 0x11b   :  { %v522_v37 = vadd.f32 %v1853_v45, %v521_v34  ;;  %v1553_v38 = vpop.f32.mrb[10].mxu1  ;;  %v557_v40 = vmax.f32 %v445_v32, 0.0 }
 0x11c   :  { %v578_v41 = vmax.f32 %v530_v33, 0.0  ;;  %v533_v42 = vadd.f32 %v1553_v38, %v1853_v45  ;;  %v524_v43 = vpop.f32.mrb[11].mxu1  ;;  %v587_v44 = vpack.c.bf16 %v559_v36, %v558_v35  ;;  %v1700_v35 = vld [vmem:[#allocation9 + $0x38] sm:$0xff]  }
 0x11d   :  { %v576_v46 = vmax.f32 %v522_v37, 0.0  ;;  %v525_v47 = vadd.f32 %v1853_v45, %v524_v43  ;;  %v586_v48 = vpack.c.bf16 %v557_v40, %v556_v39  ;;  %v1536_v49 = vpop.f32.mrb[8].mxu0 }
 0x11e   :  { %v579_v50 = vmax.f32 %v533_v42, 0.0  ;;  %v466_v51 = vadd.f32 %v1536_v49, %v1853_v45  ;;  %v457_v52 = vpop.f32.mrb[9].mxu0 }
 0x11f   :  { %v577_v53 = vmax.f32 %v525_v47, 0.0  ;;  %v458_v54 = vadd.f32 %v1853_v45, %v457_v52  ;;  %v1537_v55 = vpop.f32.mrb[10].mxu0  ;;  %1578 = vmatprep.mubr.bf16.mxu1 %v586_v48 }
 0x120   :  { %v597_v56 = vpack.c.bf16 %v579_v50, %v578_v41  ;;  %v469_v57 = vadd.f32 %v1537_v55, %v1853_v45  ;;  %v460_v58 = vpop.f32.mrb[11].mxu0  ;;  %1579 = vmatmul.mubr.bf16.gmra.mrb[20].mxu1 %v587_v44  ;;  %v562_v1 = vmax.f32 %v466_v51, 0.0 }
 0x121   :  { %v596_v59 = vpack.c.bf16 %v577_v53, %v576_v46  ;;  %v1556_v60 = vpop.f32.mrb[12].mxu1  ;;  %v461_v61 = vadd.f32 %v1853_v45, %v460_v58  ;;  %v560_v6 = vmax.f32 %v458_v54, 0.0 }
 0x122   :  { %v546_v62 = vadd.f32 %v1556_v60, %v1853_v45  ;;  %v537_v0 = vpop.f32.mrb[13].mxu1  ;;  %v563_v3 = vmax.f32 %v469_v57, 0.0 }
 0x123   :  { %v538_v4 = vadd.f32 %v1853_v45, %v537_v0  ;;  %v1557_v5 = vpop.f32.mrb[14].mxu1  ;;  %v561_v7 = vmax.f32 %v461_v61, 0.0 }
 0x124   :  { %v582_v8 = vmax.f32 %v546_v62, 0.0  ;;  %v549_v9 = vadd.f32 %v1557_v5, %v1853_v45  ;;  %v540_v10 = vpop.f32.mrb[15].mxu1  ;;  %v589_v11 = vpack.c.bf16 %v563_v3, %v562_v1 }
 0x125   :  { %v580_v12 = vmax.f32 %v538_v4, 0.0  ;;  %v541_v13 = vadd.f32 %v1853_v45, %v540_v10  ;;  %v588_v14 = vpack.c.bf16 %v561_v7, %v560_v6  ;;  %v1540_v15 = vpop.f32.mrb[12].mxu0 }
 0x126   :  { %v583_v16 = vmax.f32 %v549_v9, 0.0  ;;  %v482_v17 = vadd.f32 %v1540_v15, %v1853_v45  ;;  %v473_v18 = vpop.f32.mrb[13].mxu0 }
 0x127   :  { %v581_v19 = vmax.f32 %v541_v13, 0.0  ;;  %v474_v20 = vadd.f32 %v1853_v45, %v473_v18  ;;  %v1541_v21 = vpop.f32.mrb[14].mxu0  ;;  %1582 = vmatprep.mubr.bf16.mxu1 %v588_v14 }
 0x128   :  { %v599_v22 = vpack.c.bf16 %v583_v16, %v582_v8  ;;  %v485_v23 = vadd.f32 %v1541_v21, %v1853_v45  ;;  %v476_v24 = vpop.f32.mrb[15].mxu0  ;;  %1583 = vmatmul.mubr.bf16.gmra.mrb[24].mxu1 %v589_v11  ;;  %v566_v28 = vmax.f32 %v482_v17, 0.0 }
 0x129   :  { %v598_v25 = vpack.c.bf16 %v581_v19, %v580_v12  ;;  %v477_v26 = vadd.f32 %v1853_v45, %v476_v24  ;;  %v564_v31 = vmax.f32 %v474_v20, 0.0  ;;  %v1699_v45 = vld [vmem:[#allocation9 + $0x30] sm:$0xff]  }
 0x12a   :  { %v567_v29 = vmax.f32 %v485_v23, 0.0  ;;  %1618 = vmatprep.subr.bf16.mxu0 %v1699_v45 }
 0x12b   :  { %v565_v32 = vmax.f32 %v477_v26, 0.0  ;;  %1619 = vmatpush3.bf16.msra.mxu0 %v1699_v45 }
 0x12c   :  { %v591_v33 = vpack.c.bf16 %v567_v29, %v566_v28  ;;  %1620 = vmatprep.subr.bf16.mxu0 %v1700_v35 }
 0x12d   :  { %v590_v34 = vpack.c.bf16 %v565_v32, %v564_v31 }
 0x12f   :  { %1586 = vmatprep.mubr.bf16.mxu1 %v590_v34  ;;  %1621 = vmatpush3.bf16.msra.mxu0 %v1700_v35 }
 0x130   :  { %1587 = vmatmul.mubr.bf16.gmra.mrb[28].mxu1 %v591_v33 }
 0x131   :  { %1590 = vmatprep.mubr.bf16.mxu1 %v1864_v2  ;;  %v1902_v2 = vld [vmem:[%s2178_s3 + $0x1] ss:$0 sm:$0xff] }
 0x138   :  { %1591 = vmatmul.mubr.bf16.gmra.mrb[32].mxu1 %v1861_v63 }
 0x139   :  { %1594 = vmatprep.mubr.bf16.mxu1 %v1876_v30 }
 0x140   :  { %1595 = vmatmul.mubr.bf16.gmra.mrb[36].mxu1 %v1873_v27 }
 0x141   :  { %1598 = vmatprep.mubr.bf16.mxu1 %v596_v59 }
 0x148   :  { %1599 = vmatmul.mubr.bf16.gmra.mrb[40].mxu1 %v597_v56 }
 0x149   :  { %1602 = vmatprep.mubr.bf16.mxu1 %v598_v25 }
 0x150   :  { %1603 = vmatmul.mubr.bf16.gmra.mrb[44].mxu1 %v599_v22 }
 0x1eb   :  { %v1576_v63 = vpop.f32.mrb[16].mxu1 }
 0x1ec   :  { %v712_v30 = vadd.f32 %v1576_v63, %v1902_v2  ;;  %v703_v36 = vpop.f32.mrb[17].mxu1 }
 0x1ed   :  { %v704_v27 = vadd.f32 %v1902_v2, %v703_v36  ;;  %v1577_v37 = vpop.f32.mrb[18].mxu1 }
 0x1ee   :  { %v715_v38 = vadd.f32 %v1577_v37, %v1902_v2  ;;  %v706_v39 = vpop.f32.mrb[19].mxu1  ;;  %v832_v41 = vmax.f32 %v712_v30, 0.0 }
 0x1ef   :  { %v707_v40 = vadd.f32 %v1902_v2, %v706_v39  ;;  %v830_v43 = vmax.f32 %v704_v27, 0.0 }
 0x1f0   :  { %v833_v42 = vmax.f32 %v715_v38, 0.0 }
 0x1f1   :  { %v831_v44 = vmax.f32 %v707_v40, 0.0 }
 0x1f2   :  { %v863_v46 = vpack.c.bf16 %v833_v42, %v832_v41 }
 0x1f3   :  { %v862_v47 = vpack.c.bf16 %v831_v44, %v830_v43  ;;  %v1580_v48 = vpop.f32.mrb[20].mxu1 }
 0x1f4   :  { %v728_v49 = vadd.f32 %v1580_v48, %v1902_v2  ;;  %v719_v50 = vpop.f32.mrb[21].mxu1 }
 0x1f5   :  { %v720_v51 = vadd.f32 %v1902_v2, %v719_v50  ;;  %v1581_v52 = vpop.f32.mrb[22].mxu1  ;;  %1622 = vmatprep.mubr.bf16.mxu0 %v862_v47 }
 0x1f6   :  { %v731_v53 = vadd.f32 %v1581_v52, %v1902_v2  ;;  %v722_v54 = vpop.f32.mrb[23].mxu1  ;;  %1623 = vmatmul.mubr.bf16.vlgmr.msra.gmra.mrb[16].mxu0 %v863_v46  ;;  %v836_v56 = vmax.f32 %v728_v49, 0.0 }
 0x1f7   :  { %v723_v55 = vadd.f32 %v1902_v2, %v722_v54  ;;  %v834_v58 = vmax.f32 %v720_v51, 0.0 }
 0x1f8   :  { %v837_v57 = vmax.f32 %v731_v53, 0.0 }
 0x1f9   :  { %v835_v59 = vmax.f32 %v723_v55, 0.0 }
 0x1fa   :  { %v865_v60 = vpack.c.bf16 %v837_v57, %v836_v56 }
 0x1fb   :  { %v864_v61 = vpack.c.bf16 %v835_v59, %v834_v58  ;;  %v1584_v62 = vpop.f32.mrb[24].mxu1 }
 0x1fc   :  { %v744_v0 = vadd.f32 %v1584_v62, %v1902_v2  ;;  %v735_v1 = vpop.f32.mrb[25].mxu1 }
 0x1fd   :  { %v736_v3 = vadd.f32 %v1902_v2, %v735_v1  ;;  %v1585_v4 = vpop.f32.mrb[26].mxu1  ;;  %1626 = vmatprep.mubr.bf16.mxu0 %v864_v61 }
 0x1fe   :  { %v747_v5 = vadd.f32 %v1585_v4, %v1902_v2  ;;  %v738_v6 = vpop.f32.mrb[27].mxu1  ;;  %1627 = vmatmul.mubr.bf16.gmra.mrb[20].mxu0 %v865_v60  ;;  %v840_v8 = vmax.f32 %v744_v0, 0.0 }
 0x1ff   :  { %v739_v7 = vadd.f32 %v1902_v2, %v738_v6  ;;  %v838_v10 = vmax.f32 %v736_v3, 0.0 }
 0x200   :  { %v841_v9 = vmax.f32 %v747_v5, 0.0 }
 0x201   :  { %v839_v11 = vmax.f32 %v739_v7, 0.0 }
 0x202   :  { %v867_v12 = vpack.c.bf16 %v841_v9, %v840_v8 }
 0x203   :  { %v866_v13 = vpack.c.bf16 %v839_v11, %v838_v10  ;;  %v1588_v14 = vpop.f32.mrb[28].mxu1 }
 0x204   :  { %v760_v15 = vadd.f32 %v1588_v14, %v1902_v2  ;;  %v751_v16 = vpop.f32.mrb[29].mxu1 }
 0x205   :  { %v752_v17 = vadd.f32 %v1902_v2, %v751_v16  ;;  %v1589_v18 = vpop.f32.mrb[30].mxu1  ;;  %1630 = vmatprep.mubr.bf16.mxu0 %v866_v13 }
 0x206   :  { %v763_v19 = vadd.f32 %v1589_v18, %v1902_v2  ;;  %v754_v20 = vpop.f32.mrb[31].mxu1  ;;  %1631 = vmatmul.mubr.bf16.gmra.mrb[24].mxu0 %v867_v12  ;;  %v844_v22 = vmax.f32 %v760_v15, 0.0 }
 0x207   :  { %v755_v21 = vadd.f32 %v1902_v2, %v754_v20  ;;  %v842_v24 = vmax.f32 %v752_v17, 0.0 }
 0x208   :  { %v845_v23 = vmax.f32 %v763_v19, 0.0 }
 0x209   :  { %v843_v25 = vmax.f32 %v755_v21, 0.0  ;;  %v1939_v21 = vld [vmem:[%s2178_s3 + $0x2] ss:$0 sm:$0xff] }
 0x20a   :  { %v869_v26 = vpack.c.bf16 %v845_v23, %v844_v22 }
 0x20b   :  { %v868_v28 = vpack.c.bf16 %v843_v25, %v842_v24  ;;  %v1592_v29 = vpop.f32.mrb[32].mxu1 }
 0x20c   :  { %v776_v31 = vadd.f32 %v1592_v29, %v1902_v2  ;;  %v767_v32 = vpop.f32.mrb[33].mxu1 }
 0x20d   :  { %v768_v33 = vadd.f32 %v1902_v2, %v767_v32  ;;  %v1593_v34 = vpop.f32.mrb[34].mxu1  ;;  %1634 = vmatprep.mubr.bf16.mxu0 %v868_v28 }
 0x20e   :  { %v779_v45 = vadd.f32 %v1593_v34, %v1902_v2  ;;  %v770_v35 = vpop.f32.mrb[35].mxu1  ;;  %1635 = vmatmul.mubr.bf16.gmra.mrb[28].mxu0 %v869_v26  ;;  %v848_v30 = vmax.f32 %v776_v31, 0.0  ;;  %v1946_v26 = vld [vmem:[%s2178_s3 + $0x3] ss:$0 sm:$0xff] }
 0x20f   :  { %v771_v63 = vadd.f32 %v1902_v2, %v770_v35  ;;  %v846_v27 = vmax.f32 %v768_v33, 0.0 }
 0x210   :  { %v849_v36 = vmax.f32 %v779_v45, 0.0 }
 0x211   :  { %v847_v37 = vmax.f32 %v771_v63, 0.0 }
 0x212   :  { %v871_v38 = vpack.c.bf16 %v849_v36, %v848_v30 }
 0x213   :  { %v870_v39 = vpack.c.bf16 %v847_v37, %v846_v27  ;;  %v1596_v40 = vpop.f32.mrb[36].mxu1 }
 0x214   :  { %v792_v41 = vadd.f32 %v1596_v40, %v1902_v2  ;;  %v783_v42 = vpop.f32.mrb[37].mxu1 }
 0x215   :  { %v784_v43 = vadd.f32 %v1902_v2, %v783_v42  ;;  %v1597_v44 = vpop.f32.mrb[38].mxu1  ;;  %1638 = vmatprep.mubr.bf16.mxu0 %v870_v39 }
 0x216   :  { %v795_v46 = vadd.f32 %v1597_v44, %v1902_v2  ;;  %v786_v47 = vpop.f32.mrb[39].mxu1  ;;  %1639 = vmatmul.mubr.bf16.gmra.mrb[32].mxu0 %v871_v38  ;;  %v852_v49 = vmax.f32 %v792_v41, 0.0 }
 0x217   :  { %v787_v48 = vadd.f32 %v1902_v2, %v786_v47  ;;  %v850_v51 = vmax.f32 %v784_v43, 0.0 }
 0x218   :  { %v853_v50 = vmax.f32 %v795_v46, 0.0 }
 0x219   :  { %v851_v52 = vmax.f32 %v787_v48, 0.0 }
 0x21a   :  { %v873_v53 = vpack.c.bf16 %v853_v50, %v852_v49 }
 0x21b   :  { %v872_v54 = vpack.c.bf16 %v851_v52, %v850_v51  ;;  %v1600_v55 = vpop.f32.mrb[40].mxu1 }
 0x21c   :  { %v808_v56 = vadd.f32 %v1600_v55, %v1902_v2  ;;  %v799_v57 = vpop.f32.mrb[41].mxu1 }
 0x21d   :  { %v800_v58 = vadd.f32 %v1902_v2, %v799_v57  ;;  %v1601_v59 = vpop.f32.mrb[42].mxu1  ;;  %1642 = vmatprep.mubr.bf16.mxu0 %v872_v54 }
 0x21e   :  { %v811_v60 = vadd.f32 %v1601_v59, %v1902_v2  ;;  %v802_v61 = vpop.f32.mrb[43].mxu1  ;;  %1643 = vmatmul.mubr.bf16.gmra.mrb[36].mxu0 %v873_v53  ;;  %v856_v0 = vmax.f32 %v808_v56, 0.0 }
 0x21f   :  { %v803_v62 = vadd.f32 %v1902_v2, %v802_v61  ;;  %v854_v3 = vmax.f32 %v800_v58, 0.0 }
 0x220   :  { %v857_v1 = vmax.f32 %v811_v60, 0.0 }
 0x221   :  { %v855_v4 = vmax.f32 %v803_v62, 0.0 }
 0x222   :  { %v875_v5 = vpack.c.bf16 %v857_v1, %v856_v0 }
 0x223   :  { %v874_v6 = vpack.c.bf16 %v855_v4, %v854_v3  ;;  %v1604_v7 = vpop.f32.mrb[44].mxu1 }
 0x224   :  { %v824_v8 = vadd.f32 %v1604_v7, %v1902_v2  ;;  %v815_v9 = vpop.f32.mrb[45].mxu1 }
 0x225   :  { %v816_v10 = vadd.f32 %v1902_v2, %v815_v9  ;;  %v1605_v11 = vpop.f32.mrb[46].mxu1  ;;  %1646 = vmatprep.mubr.bf16.mxu0 %v874_v6 }
 0x226   :  { %v827_v12 = vadd.f32 %v1605_v11, %v1902_v2  ;;  %v818_v13 = vpop.f32.mrb[47].mxu1  ;;  %1647 = vmatmul.mubr.bf16.gmra.mrb[40].mxu0 %v875_v5  ;;  %v860_v15 = vmax.f32 %v824_v8, 0.0 }
 0x227   :  { %v819_v14 = vadd.f32 %v1902_v2, %v818_v13  ;;  %v858_v17 = vmax.f32 %v816_v10, 0.0 }
 0x228   :  { %v861_v16 = vmax.f32 %v827_v12, 0.0 }
 0x229   :  { %v859_v18 = vmax.f32 %v819_v14, 0.0 }
 0x22a   :  { %v877_v19 = vpack.c.bf16 %v861_v16, %v860_v15 }
 0x22b   :  { %v876_v20 = vpack.c.bf16 %v859_v18, %v858_v17 }
 0x22d   :  { %1650 = vmatprep.mubr.bf16.mxu0 %v876_v20 }
 0x22e   :  { %1651 = vmatmul.mubr.bf16.gmra.mrb[44].mxu0 %v877_v19 }
 0x2c9   :  { %v1624_v22 = vpop.f32.mrb[16].mxu0 }
 0x2ca   :  { %v990_v23 = vadd.f32 %v1624_v22, %v1939_v21  ;;  %v981_v24 = vpop.f32.mrb[17].mxu0 }
 0x2cb   :  { %v982_v25 = vadd.f32 %v1939_v21, %v981_v24  ;;  %v1625_v2 = vpop.f32.mrb[18].mxu0 }
 0x2cc   :  { %v1110_v28 = vmax.f32 %v990_v23, 0.0  ;;  %v993_v29 = vadd.f32 %v1625_v2, %v1939_v21  ;;  %v984_v31 = vpop.f32.mrb[19].mxu0 }
 0x2cd   :  { %v1108_v32 = vmax.f32 %v982_v25, 0.0  ;;  %v985_v33 = vadd.f32 %v1939_v21, %v984_v31 }
 0x2ce   :  { %v1111_v34 = vmax.f32 %v993_v29, 0.0  ;;  %v1147_v45 = vmul.f32 %v1946_v26, %v1110_v28 }
 0x2cf   :  { %v1109_v35 = vmax.f32 %v985_v33, 0.0  ;;  %v1145_v63 = vmul.f32 %v1946_v26, %v1108_v32 }
 0x2d0   :  { %1181 = vadd.xlane.f32.xlu1 %v1147_v45  ;;  %v1148_v37 = vmul.f32 %v1946_v26, %v1111_v34 }
 0x2d1   :  { %v1628_v30 = vpop.f32.mrb[20].mxu0  ;;  %1177 = vadd.xlane.f32.xlu0 %v1145_v63  ;;  %v1146_v40 = vmul.f32 %v1946_v26, %v1109_v35 }
 0x2d2   :  { %v1006_v36 = vadd.f32 %v1628_v30, %v1939_v21  ;;  %v997_v27 = vpop.f32.mrb[21].mxu0 }
 0x2d3   :  { %v998_v38 = vadd.f32 %v1939_v21, %v997_v27  ;;  %v1629_v39 = vpop.f32.mrb[22].mxu0 }
 0x2d4   :  { %v1114_v41 = vmax.f32 %v1006_v36, 0.0  ;;  %v1009_v42 = vadd.f32 %v1629_v39, %v1939_v21  ;;  %1183 = vadd.xlane.f32.xlu1 %v1148_v37  ;;  %v1000_v43 = vpop.f32.mrb[23].mxu0 }
 0x2d5   :  { %v1001_v44 = vadd.f32 %v1939_v21, %v1000_v43  ;;  %1179 = vadd.xlane.f32.xlu0 %v1146_v40  ;;  %v1112_v48 = vmax.f32 %v998_v38, 0.0 }
 0x2d6   :  { %v1115_v46 = vmax.f32 %v1009_v42, 0.0  ;;  %v1151_v47 = vmul.f32 %v1946_v26, %v1114_v41 }
 0x2d7   :  { %v1113_v49 = vmax.f32 %v1001_v44, 0.0  ;;  %v1149_v56 = vmul.f32 %v1946_v26, %v1112_v48 }
 0x2d8   :  { %v1152_v50 = vmul.f32 %v1946_v26, %v1115_v46 }
 0x2d9   :  { %v1632_v51 = vpop.f32.mrb[24].mxu0  ;;  %1189 = vadd.xlane.f32.xlu0 %v1151_v47  ;;  %v1150_v60 = vmul.f32 %v1946_v26, %v1113_v49 }
 0x2da   :  { %v1022_v52 = vadd.f32 %v1632_v51, %v1939_v21  ;;  %1191 = vadd.xlane.f32.xlu1 %v1152_v50  ;;  %v1013_v53 = vpop.f32.mrb[25].mxu0 }
 0x2db   :  { %v1014_v54 = vadd.f32 %v1939_v21, %v1013_v53  ;;  %v1633_v55 = vpop.f32.mrb[26].mxu0 }
 0x2dc   :  { %v1118_v57 = vmax.f32 %v1022_v52, 0.0  ;;  %v1025_v58 = vadd.f32 %v1633_v55, %v1939_v21  ;;  %v1016_v59 = vpop.f32.mrb[27].mxu0 }
 0x2dd   :  { %v1017_v61 = vadd.f32 %v1939_v21, %v1016_v59  ;;  %1185 = vadd.xlane.f32.xlu0 %v1149_v56  ;;  %v1116_v1 = vmax.f32 %v1014_v54, 0.0 }
 0x2de   :  { %v1119_v62 = vmax.f32 %v1025_v58, 0.0  ;;  %1187 = vadd.xlane.f32.xlu1 %v1150_v60  ;;  %v1155_v0 = vmul.f32 %v1946_v26, %v1118_v57 }
 0x2df   :  { %v1117_v3 = vmax.f32 %v1017_v61, 0.0  ;;  %v1153_v10 = vmul.f32 %v1946_v26, %v1116_v1 }
 0x2e0   :  { %v1156_v4 = vmul.f32 %v1946_v26, %v1119_v62 }
 0x2e1   :  { %v1636_v5 = vpop.f32.mrb[28].mxu0  ;;  %1197 = vadd.xlane.f32.xlu0 %v1155_v0  ;;  %v1154_v14 = vmul.f32 %v1946_v26, %v1117_v3 }
 0x2e2   :  { %v1038_v6 = vadd.f32 %v1636_v5, %v1939_v21  ;;  %v1029_v7 = vpop.f32.mrb[29].mxu0  ;;  %1199 = vadd.xlane.f32.xlu1 %v1156_v4 }
 0x2e3   :  { %v1030_v8 = vadd.f32 %v1939_v21, %v1029_v7  ;;  %v1637_v9 = vpop.f32.mrb[30].mxu0 }
 0x2e4   :  { %v1122_v11 = vmax.f32 %v1038_v6, 0.0  ;;  %v1041_v12 = vadd.f32 %v1637_v9, %v1939_v21  ;;  %v1032_v13 = vpop.f32.mrb[31].mxu0 }
 0x2e5   :  { %v1033_v15 = vadd.f32 %v1939_v21, %v1032_v13  ;;  %1193 = vadd.xlane.f32.xlu0 %v1153_v10  ;;  %v1120_v18 = vmax.f32 %v1030_v8, 0.0 }
 0x2e6   :  { %v1123_v16 = vmax.f32 %v1041_v12, 0.0  ;;  %1195 = vadd.xlane.f32.xlu1 %v1154_v14  ;;  %v1159_v17 = vmul.f32 %v1946_v26, %v1122_v11 }
 0x2e7   :  { %v1121_v19 = vmax.f32 %v1033_v15, 0.0  ;;  %v1157_v28 = vmul.f32 %v1946_v26, %v1120_v18 }
 0x2e8   :  { %v1160_v20 = vmul.f32 %v1946_v26, %v1123_v16 }
 0x2e9   :  { %v1640_v22 = vpop.f32.mrb[32].mxu0  ;;  %1205 = vadd.xlane.f32.xlu0 %v1159_v17  ;;  %v1158_v33 = vmul.f32 %v1946_v26, %v1121_v19 }
 0x2ea   :  { %v1054_v23 = vadd.f32 %v1640_v22, %v1939_v21  ;;  %v1045_v24 = vpop.f32.mrb[33].mxu0  ;;  %1207 = vadd.xlane.f32.xlu1 %v1160_v20 }
 0x2eb   :  { %v1046_v25 = vadd.f32 %v1939_v21, %v1045_v24  ;;  %v1641_v2 = vpop.f32.mrb[34].mxu0 }
 0x2ec   :  { %v1126_v29 = vmax.f32 %v1054_v23, 0.0  ;;  %v1057_v31 = vadd.f32 %v1641_v2, %v1939_v21  ;;  %v1048_v32 = vpop.f32.mrb[35].mxu0 }
 0x2ed   :  { %v1049_v34 = vadd.f32 %v1939_v21, %v1048_v32  ;;  %1201 = vadd.xlane.f32.xlu0 %v1157_v28  ;;  %v1124_v63 = vmax.f32 %v1046_v25, 0.0 }
 0x2ee   :  { %v1127_v45 = vmax.f32 %v1057_v31, 0.0  ;;  %1203 = vadd.xlane.f32.xlu1 %v1158_v33  ;;  %v1163_v35 = vmul.f32 %v1946_v26, %v1126_v29 }
 0x2ef   :  { %v1125_v30 = vmax.f32 %v1049_v34, 0.0  ;;  %v1161_v41 = vmul.f32 %v1946_v26, %v1124_v63 }
 0x2f0   :  { %v1164_v36 = vmul.f32 %v1946_v26, %v1127_v45 }
 0x2f1   :  { %v1644_v27 = vpop.f32.mrb[36].mxu0  ;;  %1213 = vadd.xlane.f32.xlu0 %v1163_v35  ;;  %v1162_v46 = vmul.f32 %v1946_v26, %v1125_v30 }
 0x2f2   :  { %v1070_v37 = vadd.f32 %v1644_v27, %v1939_v21  ;;  %v1061_v38 = vpop.f32.mrb[37].mxu0  ;;  %1215 = vadd.xlane.f32.xlu1 %v1164_v36 }
 0x2f3   :  { %v1062_v39 = vadd.f32 %v1939_v21, %v1061_v38  ;;  %v1645_v40 = vpop.f32.mrb[38].mxu0 }
 0x2f4   :  { %v1130_v42 = vmax.f32 %v1070_v37, 0.0  ;;  %v1073_v43 = vadd.f32 %v1645_v40, %v1939_v21  ;;  %v1064_v44 = vpop.f32.mrb[39].mxu0 }
 0x2f5   :  { %v1065_v47 = vadd.f32 %v1939_v21, %v1064_v44  ;;  %1209 = vadd.xlane.f32.xlu0 %v1161_v41  ;;  %v1128_v50 = vmax.f32 %v1062_v39, 0.0 }
 0x2f6   :  { %v1131_v48 = vmax.f32 %v1073_v43, 0.0  ;;  %1211 = vadd.xlane.f32.xlu1 %v1162_v46  ;;  %v1167_v49 = vmul.f32 %v1946_v26, %v1130_v42 }
 0x2f7   :  { %v1129_v51 = vmax.f32 %v1065_v47, 0.0  ;;  %v1165_v58 = vmul.f32 %v1946_v26, %v1128_v50 }
 0x2f8   :  { %v1168_v52 = vmul.f32 %v1946_v26, %v1131_v48 }
 0x2f9   :  { %v1648_v53 = vpop.f32.mrb[40].mxu0  ;;  %1221 = vadd.xlane.f32.xlu0 %v1167_v49  ;;  %v1166_v62 = vmul.f32 %v1946_v26, %v1129_v51 }
 0x2fa   :  { %v1086_v54 = vadd.f32 %v1648_v53, %v1939_v21  ;;  %v1077_v55 = vpop.f32.mrb[41].mxu0  ;;  %1223 = vadd.xlane.f32.xlu1 %v1168_v52 }
 0x2fb   :  { %v1078_v56 = vadd.f32 %v1939_v21, %v1077_v55  ;;  %v1649_v57 = vpop.f32.mrb[42].mxu0 }
 0x2fc   :  { %v1134_v59 = vmax.f32 %v1086_v54, 0.0  ;;  %v1089_v60 = vadd.f32 %v1649_v57, %v1939_v21  ;;  %v1080_v61 = vpop.f32.mrb[43].mxu0 }
 0x2fd   :  { %v1081_v0 = vadd.f32 %v1939_v21, %v1080_v61  ;;  %1217 = vadd.xlane.f32.xlu0 %v1165_v58  ;;  %v1132_v4 = vmax.f32 %v1078_v56, 0.0 }
 0x2fe   :  { %v1135_v1 = vmax.f32 %v1089_v60, 0.0  ;;  %1219 = vadd.xlane.f32.xlu1 %v1166_v62  ;;  %v1171_v3 = vmul.f32 %v1946_v26, %v1134_v59 }
 0x2ff   :  { %v1133_v5 = vmax.f32 %v1081_v0, 0.0  ;;  %v1169_v12 = vmul.f32 %v1946_v26, %v1132_v4 }
 0x300   :  { %v1172_v6 = vmul.f32 %v1946_v26, %v1135_v1 }
 0x301   :  { %v1652_v7 = vpop.f32.mrb[44].mxu0  ;;  %1229 = vadd.xlane.f32.xlu0 %v1171_v3  ;;  %v1170_v14 = vmul.f32 %v1946_v26, %v1133_v5 }
 0x302   :  { %v1093_v8 = vpop.f32.mrb[45].mxu0  ;;  %1231 = vadd.xlane.f32.xlu1 %v1172_v6  ;;  %v1102_v9 = vadd.f32 %v1652_v7, %v1939_v21 }
 0x303   :  { %v1094_v10 = vadd.f32 %v1939_v21, %v1093_v8  ;;  %v1653_v11 = vpop.f32.mrb[46].mxu0 }
 0x304   :  { %v1096_v13 = vpop.f32.mrb[47].mxu0  ;;  %v1105_v16 = vadd.f32 %v1653_v11, %v1939_v21  ;;  %v1138_v18 = vmax.f32 %v1102_v9, 0.0 }
 0x305   :  { %v1136_v15 = vmax.f32 %v1094_v10, 0.0  ;;  %v1097_v17 = vadd.f32 %v1939_v21, %v1096_v13  ;;  %1225 = vadd.xlane.f32.xlu0 %v1169_v12  ;;  %v2013_v21 = vld [vmem:[%s2178_s3 + $0x4] ss:$0 sm:$0xff] }
 0x306   :  { %1227 = vadd.xlane.f32.xlu1 %v1170_v14  ;;  %v1139_v22 = vmax.f32 %v1105_v16, 0.0  ;;  %v1175_v24 = vmul.f32 %v1946_v26, %v1138_v18 }
 0x307   :  { %v1137_v19 = vmax.f32 %v1097_v17, 0.0  ;;  %v1173_v20 = vmul.f32 %v1946_v26, %v1136_v15 }
 0x308   :  { %v1176_v25 = vmul.f32 %v1946_v26, %v1139_v22 }
 0x309   :  { %1233 = vadd.xlane.f32.xlu0 %v1173_v20  ;;  %v1174_v23 = vmul.f32 %v1946_v26, %v1137_v19 }
 0x30b   :  { %1235 = vadd.xlane.f32.xlu1 %v1174_v23 }
 0x30d   :  { %1237 = vadd.xlane.f32.xlu0 %v1175_v24 }
 0x30f   :  { %1239 = vadd.xlane.f32.xlu1 %v1176_v25 }
 0x35d   :  { %v1182_v2 = vpop.xlane.xlu1 %1181 }
 0x35e   :  { %v1248_v28 = vadd.f32 %v2013_v21, %v1182_v2  ;;  %v1178_v29 = vpop.xlane.xlu0 %1177 }
 0x35f   :  { %v1246_v31 = vadd.f32 %v2013_v21, %v1178_v29 }
 0x360   :  { %1281 = vst.msk [vmem:[%s2181_s6 + $0x10] sm:$0xff] %vm1278_vm4, %v1248_v28 }
 0x361   :  { %1279 = vst.msk [vmem:[%s2181_s6] sm:$0xff] %vm1278_vm4, %v1246_v31  ;;  %v1184_v26 = vpop.xlane.xlu1 %1183 }
 0x362   :  { %v1249_v32 = vadd.f32 %v2013_v21, %v1184_v26  ;;  %v1180_v33 = vpop.xlane.xlu0 %1179 }
 0x363   :  { %v1247_v34 = vadd.f32 %v2013_v21, %v1180_v33 }
 0x364   :  { %1282 = vst.msk [vmem:[%s2181_s6 + $0x18] sm:$0xff] %vm1278_vm4, %v1249_v32 }
 0x365   :  { %1280 = vst.msk [vmem:[%s2181_s6 + $0x8] sm:$0xff] %vm1278_vm4, %v1247_v34 }
 0x366   :  { %v1190_v45 = vpop.xlane.xlu0 %1189 }
 0x367   :  { %v1252_v35 = vadd.f32 %v2013_v21, %v1190_v45  ;;  %v1192_v63 = vpop.xlane.xlu1 %1191 }
 0x368   :  { %v1253_v30 = vadd.f32 %v2013_v21, %v1192_v63 }
 0x369   :  { %1285 = vst.msk [vmem:[%s2181_s6 + $0x30] sm:$0xff] %vm1278_vm4, %v1252_v35 }
 0x36a   :  { %1286 = vst.msk [vmem:[%s2181_s6 + $0x38] sm:$0xff] %vm1278_vm4, %v1253_v30  ;;  %v1186_v36 = vpop.xlane.xlu0 %1185 }
 0x36b   :  { %v1250_v27 = vadd.f32 %v2013_v21, %v1186_v36  ;;  %v1188_v37 = vpop.xlane.xlu1 %1187 }
 0x36c   :  { %v1251_v38 = vadd.f32 %v2013_v21, %v1188_v37 }
 0x36d   :  { %1283 = vst.msk [vmem:[%s2181_s6 + $0x20] sm:$0xff] %vm1278_vm4, %v1250_v27 }
 0x36e   :  { %1284 = vst.msk [vmem:[%s2181_s6 + $0x28] sm:$0xff] %vm1278_vm4, %v1251_v38  ;;  %v1198_v39 = vpop.xlane.xlu0 %1197 }
 0x36f   :  { %v1256_v40 = vadd.f32 %v2013_v21, %v1198_v39  ;;  %v1200_v41 = vpop.xlane.xlu1 %1199 }
 0x370   :  { %v1257_v42 = vadd.f32 %v2013_v21, %v1200_v41 }
 0x371   :  { %1289 = vst.msk [vmem:[%s2181_s6 + $0x50] sm:$0xff] %vm1278_vm4, %v1256_v40 }
 0x372   :  { %1290 = vst.msk [vmem:[%s2181_s6 + $0x58] sm:$0xff] %vm1278_vm4, %v1257_v42  ;;  %v1194_v43 = vpop.xlane.xlu0 %1193 }
 0x373   :  { %v1254_v44 = vadd.f32 %v2013_v21, %v1194_v43  ;;  %v1196_v46 = vpop.xlane.xlu1 %1195 }
 0x374   :  { %v1255_v47 = vadd.f32 %v2013_v21, %v1196_v46 }
 0x375   :  { %1287 = vst.msk [vmem:[%s2181_s6 + $0x40] sm:$0xff] %vm1278_vm4, %v1254_v44 }
 0x376   :  { %1288 = vst.msk [vmem:[%s2181_s6 + $0x48] sm:$0xff] %vm1278_vm4, %v1255_v47  ;;  %v1206_v48 = vpop.xlane.xlu0 %1205 }
 0x377   :  { %v1260_v49 = vadd.f32 %v2013_v21, %v1206_v48  ;;  %v1208_v50 = vpop.xlane.xlu1 %1207 }
 0x378   :  { %v1261_v51 = vadd.f32 %v2013_v21, %v1208_v50 }
 0x379   :  { %1293 = vst.msk [vmem:[%s2181_s6 + $0x70] sm:$0xff] %vm1278_vm4, %v1260_v49 }
 0x37a   :  { %1294 = vst.msk [vmem:[%s2181_s6 + $0x78] sm:$0xff] %vm1278_vm4, %v1261_v51  ;;  %v1202_v52 = vpop.xlane.xlu0 %1201 }
 0x37b   :  { %v1258_v53 = vadd.f32 %v2013_v21, %v1202_v52  ;;  %v1204_v54 = vpop.xlane.xlu1 %1203 }
 0x37c   :  { %v1259_v55 = vadd.f32 %v2013_v21, %v1204_v54 }
 0x37d   :  { %1291 = vst.msk [vmem:[%s2181_s6 + $0x60] sm:$0xff] %vm1278_vm4, %v1258_v53 }
 0x37e   :  { %1292 = vst.msk [vmem:[%s2181_s6 + $0x68] sm:$0xff] %vm1278_vm4, %v1259_v55  ;;  %v1214_v56 = vpop.xlane.xlu0 %1213 }
 0x37f   :  { %v1264_v57 = vadd.f32 %v2013_v21, %v1214_v56  ;;  %v1216_v58 = vpop.xlane.xlu1 %1215 }
 0x380   :  { %v1265_v59 = vadd.f32 %v2013_v21, %v1216_v58 }
 0x381   :  { %1297 = vst.msk [vmem:[%s2181_s6 + $0x90] sm:$0xff] %vm1278_vm4, %v1264_v57 }
 0x382   :  { %1298 = vst.msk [vmem:[%s2181_s6 + $0x98] sm:$0xff] %vm1278_vm4, %v1265_v59  ;;  %v1210_v60 = vpop.xlane.xlu0 %1209 }
 0x383   :  { %v1262_v61 = vadd.f32 %v2013_v21, %v1210_v60  ;;  %v1212_v62 = vpop.xlane.xlu1 %1211 }
 0x384   :  { %v1263_v0 = vadd.f32 %v2013_v21, %v1212_v62 }
 0x385   :  { %1295 = vst.msk [vmem:[%s2181_s6 + $0x80] sm:$0xff] %vm1278_vm4, %v1262_v61 }
 0x386   :  { %1296 = vst.msk [vmem:[%s2181_s6 + $0x88] sm:$0xff] %vm1278_vm4, %v1263_v0  ;;  %v1222_v1 = vpop.xlane.xlu0 %1221 }
 0x387   :  { %v1268_v3 = vadd.f32 %v2013_v21, %v1222_v1  ;;  %v1224_v4 = vpop.xlane.xlu1 %1223 }
 0x388   :  { %v1269_v5 = vadd.f32 %v2013_v21, %v1224_v4 }
 0x389   :  { %1301 = vst.msk [vmem:[%s2181_s6 + $0xb0] sm:$0xff] %vm1278_vm4, %v1268_v3 }
 0x38a   :  { %1302 = vst.msk [vmem:[%s2181_s6 + $0xb8] sm:$0xff] %vm1278_vm4, %v1269_v5  ;;  %v1218_v6 = vpop.xlane.xlu0 %1217 }
 0x38b   :  { %v1266_v7 = vadd.f32 %v2013_v21, %v1218_v6  ;;  %v1220_v8 = vpop.xlane.xlu1 %1219 }
 0x38c   :  { %v1267_v9 = vadd.f32 %v2013_v21, %v1220_v8 }
 0x38d   :  { %1299 = vst.msk [vmem:[%s2181_s6 + $0xa0] sm:$0xff] %vm1278_vm4, %v1266_v7 }
 0x38e   :  { %1300 = vst.msk [vmem:[%s2181_s6 + $0xa8] sm:$0xff] %vm1278_vm4, %v1267_v9  ;;  %v1230_v10 = vpop.xlane.xlu0 %1229 }
 0x38f   :  { %v1272_v11 = vadd.f32 %v2013_v21, %v1230_v10  ;;  %v1232_v12 = vpop.xlane.xlu1 %1231 }
 0x390   :  { %v1273_v13 = vadd.f32 %v2013_v21, %v1232_v12 }
 0x391   :  { %1305 = vst.msk [vmem:[%s2181_s6 + $0xd0] sm:$0xff] %vm1278_vm4, %v1272_v11 }
 0x392   :  { %1306 = vst.msk [vmem:[%s2181_s6 + $0xd8] sm:$0xff] %vm1278_vm4, %v1273_v13  ;;  %v1226_v14 = vpop.xlane.xlu0 %1225 }
 0x393   :  { %v1270_v15 = vadd.f32 %v2013_v21, %v1226_v14  ;;  %v1228_v16 = vpop.xlane.xlu1 %1227 }
 0x394   :  { %v1271_v17 = vadd.f32 %v2013_v21, %v1228_v16 }
 0x395   :  { %1303 = vst.msk [vmem:[%s2181_s6 + $0xc0] sm:$0xff] %vm1278_vm4, %v1270_v15 }
 0x396   :  { %1304 = vst.msk [vmem:[%s2181_s6 + $0xc8] sm:$0xff] %vm1278_vm4, %v1271_v17  ;;  %v1234_v18 = vpop.xlane.xlu0 %1233 }
 0x397   :  { %v1274_v19 = vadd.f32 %v2013_v21, %v1234_v18 }
 0x398   :  { %v1236_v20 = vpop.xlane.xlu1 %1235 }
 0x399   :  { %1307 = vst.msk [vmem:[%s2181_s6 + $0xe0] sm:$0xff] %vm1278_vm4, %v1274_v19  ;;  %v1275_v22 = vadd.f32 %v2013_v21, %v1236_v20 }
 0x39a   :  { %v1238_v23 = vpop.xlane.xlu0 %1237 }
 0x39b   :  { %1308 = vst.msk [vmem:[%s2181_s6 + $0xe8] sm:$0xff] %vm1278_vm4, %v1275_v22  ;;  %v1276_v24 = vadd.f32 %v2013_v21, %v1238_v23 }
 0x39c   :  { %v1240_v25 = vpop.xlane.xlu1 %1239 }
 0x39d   :  { %1309 = vst.msk [vmem:[%s2181_s6 + $0xf0] sm:$0xff] %vm1278_vm4, %v1276_v24  ;;  %v1277_v2 = vadd.f32 %v2013_v21, %v1240_v25 }
 0x39f   :  { %1310 = vst.msk [vmem:[%s2181_s6 + $0xf8] sm:$0xff] %vm1278_vm4, %v1277_v2 }
 0x3a0   :  { %1315 = vsyncpa [#allocation8], 1 }
 0x3a1   :  { %1316 = vsyncpa [#allocation10], 1 }

</bundles_post_ra>
